<compile_context>
chip_gen: v7x
topology: tpu7x:2x2x1
jax: 0.10.0
libtpu: 0.0.40
codegen_flags: <defaults>
</compile_context>

<pallas_src>
import functools

import jax
import jax.numpy as jnp
from jax.experimental import pallas as pl
from jax.experimental.pallas import tpu as pltpu


def _round_up(x, m):
    return ((x + m - 1) // m) * m


def _vmem_budget_bytes():
    """Per-generation VMEM budget (~85% of physical; 64 MiB v7x-safe fallback)."""
    try:
        cap = int(pltpu.get_tpu_info().vmem_capacity_bytes)
    except Exception:
        cap = 64 * 1024 * 1024
    return int(cap * 0.85)


def _block_spec(shape, index_map, buffer_count=None):
    """BlockSpec with optional multi-buffering; falls back if unsupported."""
    if buffer_count is not None and hasattr(pl, "Buffered"):
        try:
            return pl.BlockSpec(shape, index_map,
                                pipeline_mode=pl.Buffered(buffer_count))
        except Exception:
            pass
    return pl.BlockSpec(shape, index_map)


def _select_tiling(n, f_pad, hop_bytes, budget, max_resident_nodes, col_tile):
    """Choose (n_pad, adjacency column tile) from the VMEM budget."""
    def est(n_pad_, tc_, ahat_bufs):
        ahat = n_pad_ * tc_ * hop_bytes * ahat_bufs          # pipelined Ahat tiles
        io = n_pad_ * f_pad * 4 * 4                          # x + out (2 bufs each)
        wb = 2 * (f_pad * f_pad * 4 + f_pad * 4)             # W + b (2 bufs)
        scratch = n_pad_ * f_pad * (4 + 4 + hop_bytes)       # sacc + facc + fsrc
        return ahat + io + wb + scratch

    n_pad_res = _round_up(n, 128)
    if max_resident_nodes is not None:
        resident = n <= max_resident_nodes
    else:
        resident = est(n_pad_res, n_pad_res, 2) <= budget
    if resident:
        return n_pad_res, n_pad_res

    if col_tile is not None:
        tc = col_tile
    else:
        tc = 128
        for cand in range(2048, 127, -128):
            if est(_round_up(n, cand), cand, 3) <= budget:
                tc = cand
                break
    return _round_up(n, tc), tc


# ----------------------------- Pallas kernel -----------------------------

def _stack_kernel(ahat_ref, x_ref, w_ref, b_ref, out_ref,
                  sacc_ref, facc_ref, fsrc_ref,
                  *, n_hops, bias_scale, col_tile):
    """Fused ConvLayer stack.

    grid = (num_layers, n_hops, num_col_tiles); per layer l:
        S = x + Ahat @ x + ... + Ahat^n_hops @ x
        x = relu(S @ W_l + (n_hops + 1) * b_l)
    out_ref (constant index_map => resident) holds the per-layer activation x.
    Hop h, column tile c accumulates Ahat[:, c] @ fsrc[c, :] into facc (f32);
    at hop end facc folds into sacc and becomes the next hop's bf16 source.
    """
    l = pl.program_id(0)
    h = pl.program_id(1)
    c = pl.program_id(2)
    n_cols = pl.num_programs(2)

    first_step = (l == 0) & (h == 0) & (c == 0)
    layer_start = (h == 0) & (c == 0)
    hop_end = c == n_cols - 1
    layer_end = hop_end & (h == n_hops - 1)
    single_tile = col_tile == fsrc_ref.shape[0]

    @pl.when(first_step)
    def _seed_activation():
        out_ref[...] = x_ref[...]

    @pl.when(layer_start)
    def _init_layer():
        xin = out_ref[...]                       # layer input (prev activation)
        sacc_ref[...] = xin                      # hop-0 term of S
        fsrc_ref[...] = xin.astype(fsrc_ref.dtype)

    # partial product for this column tile:  Ahat[:, c-tile] @ fsrc[c-tile, :]
    if single_tile:
        src = fsrc_ref[...]
    else:
        row0 = pl.multiple_of(c * col_tile, col_tile)
        src = fsrc_ref[pl.ds(row0, col_tile), :]

    part = jnp.dot(ahat_ref[...], src, preferred_element_type=jnp.float32)

    if single_tile:
        facc_ref[...] = part                     # direct store, no zero pass
    else:
        @pl.when(c == 0)
        def _store_first():
            facc_ref[...] = part

        @pl.when(c > 0)
        def _accumulate():
            facc_ref[...] += part

    # end of hop: fold finished f_{h+1} into S and stage next hop's source
    @pl.when(hop_end)
    def _fold_hop():
        sacc_ref[...] += facc_ref[...]

    @pl.when(hop_end & (h < n_hops - 1))
    def _next_hop_source():
        fsrc_ref[...] = facc_ref[...].astype(fsrc_ref.dtype)

    # end of layer: one shared-weight matmul, scaled bias, relu -> out_ref
    @pl.when(layer_end)
    def _finish_layer():
        y = jnp.dot(sacc_ref[...], w_ref[0],
                    preferred_element_type=jnp.float32)
        y = y + jnp.float32(bias_scale) * b_ref[0]
        out_ref[...] = jnp.maximum(y, 0.0)


# ------------------------------- wrapper ----------------------------------

def graph_embedding_forward(adj, feat, params, *, k,
                            hop_dtype=jnp.bfloat16,
                            max_resident_nodes=None, col_tile=None):
    """Stack of ConvLayers (method='sum', bias, relu) over a dense graph.

    adj[u, v] != 0  <=>  edge u -> v.
    params: list of (W_l (F_in_l, F_out_l), b_l (F_out_l,)).
    hop_dtype: operand dtype of the propagation matmuls (f32 accumulation).
    """
    assert k >= 1, "fused kernel implements k >= 1 propagation hops"
    n = adj.shape[0]
    f_in = feat.shape[1]
    num_layers = len(params)

    # --- graph normalization, done once and shared by every layer/hop -----
    adj = adj.astype(jnp.float32)
    # DGL out_degrees() counts edges (UNWEIGHTED), clamp(min=1)
    degs = jnp.maximum(jnp.sum((adj != 0).astype(jnp.float32), axis=1), 1.0)
    norm = jax.lax.rsqrt(degs)
    ahat = (norm[:, None] * adj.T) * norm[None, :]

    # --- padding / tiling --------------------------------------------------
    widths = [f_in] + [w.shape[1] for (w, _) in params]
    f_pad = _round_up(max(widths), 128)
    hop_dtype = jnp.dtype(hop_dtype)
    hop_bytes = hop_dtype.itemsize
    budget = _vmem_budget_bytes()
    n_pad, tc = _select_tiling(n, f_pad, hop_bytes, budget,
                               max_resident_nodes, col_tile)
    num_col_tiles = n_pad // tc

    ahat_p = jnp.zeros((n_pad, n_pad), hop_dtype).at[:n, :n].set(
        ahat.astype(hop_dtype))
    x_p = jnp.zeros((n_pad, f_pad), jnp.float32).at[:n, :f_in].set(
        feat.astype(jnp.float32))

    w_stack = jnp.zeros((num_layers, f_pad, f_pad), jnp.float32)
    b_stack = jnp.zeros((num_layers, 1, f_pad), jnp.float32)
    for i, (w, b) in enumerate(params):
        w_stack = w_stack.at[i, :w.shape[0], :w.shape[1]].set(
            w.astype(jnp.float32))
        b_stack = b_stack.at[i, 0, :b.shape[-1]].set(
            b.reshape(-1).astype(jnp.float32))

    grid = (num_layers, k, num_col_tiles)
    kernel = functools.partial(_stack_kernel, n_hops=k,
                               bias_scale=float(k + 1), col_tile=tc)

    flops = num_layers * (k * 2 * n_pad * n_pad * f_pad
                          + 2 * n_pad * f_pad * f_pad)
    adj_passes = 1 if num_col_tiles == 1 else num_layers * k
    bytes_accessed = (hop_bytes * n_pad * n_pad * adj_passes
                      + 4 * n_pad * f_pad * 2
                      + 4 * num_layers * (f_pad * f_pad + f_pad))

    out_p = pl.pallas_call(
        kernel,
        out_shape=jax.ShapeDtypeStruct((n_pad, f_pad), jnp.float32),
        grid_spec=pltpu.PrefetchScalarGridSpec(
            num_scalar_prefetch=0,
            grid=grid,
            in_specs=[
                # Ahat column tiles (resident when num_col_tiles == 1,
                # 3-deep pipelined when streamed)
                _block_spec((n_pad, tc), lambda l, h, c: (0, c),
                            buffer_count=3 if num_col_tiles > 1 else None),
                # initial node features (constant index -> fetched once)
                pl.BlockSpec((n_pad, f_pad), lambda l, h, c: (0, 0)),
                # per-layer weight / bias
                pl.BlockSpec((1, f_pad, f_pad), lambda l, h, c: (l, 0, 0)),
                pl.BlockSpec((1, 1, f_pad), lambda l, h, c: (l, 0, 0)),
            ],
            # constant index -> resident; reused as the layer activation buffer
            out_specs=pl.BlockSpec((n_pad, f_pad), lambda l, h, c: (0, 0)),
            scratch_shapes=[
                pltpu.VMEM((n_pad, f_pad), jnp.float32),   # sacc (running S)
                pltpu.VMEM((n_pad, f_pad), jnp.float32),   # facc (hop accum)
                pltpu.VMEM((n_pad, f_pad), hop_dtype),     # fsrc (hop source)
            ],
        ),
        compiler_params=pltpu.CompilerParams(
            dimension_semantics=("arbitrary", "arbitrary", "arbitrary"),
            vmem_limit_bytes=int(budget)),
        cost_estimate=pl.CostEstimate(flops=int(flops), transcendentals=0,
                                      bytes_accessed=int(bytes_accessed)),
    )(ahat_p, x_p, w_stack, b_stack)

    f_out = params[-1][0].shape[1]
    return out_p[:n, :f_out]


def conv_layer_forward(adj, feat, w0, b0, *, k, **kwargs):
    """Single ConvLayer (the spec module) == 1-layer stack."""
    return graph_embedding_forward(adj, feat, [(w0, b0)], k=k, **kwargs)


# --------------------------- parameter helpers ----------------------------

def xavier_uniform(key, shape):
    fan_in, fan_out = shape
    bound = jnp.sqrt(6.0 / (fan_in + fan_out))
    return jax.random.uniform(key, shape, jnp.float32, -bound, bound)


def init_graph_embedding_params(key, in_feats, hid_feats, out_feats,
                                num_layers):
    """Only weights[0]/biases[0] are ever used by the forward pass."""
    params = []
    cur_in = in_feats
    cur_hid = hid_feats
    for i in range(num_layers):
        if i == num_layers - 1:
            cur_hid = out_feats
        key, wk = jax.random.split(key)
        w0 = xavier_uniform(wk, (cur_in, cur_hid))
        b0 = jnp.zeros((cur_hid,), jnp.float32)
        params.append((w0, b0))
        cur_in = cur_hid
    return params


# ---------------------- pure-JAX reference (original order) ---------------

def _reference_forward(adj, feat, params, *, k):
    adj = adj.astype(jnp.float32)
    degs = jnp.maximum(jnp.sum((adj != 0).astype(jnp.float32), axis=1), 1.0)
    norm = jnp.power(degs, -0.5)[:, None]
    x = feat.astype(jnp.float32)
    for (w, b) in params:
        rst = x @ w + b
        f = x
        for _ in range(k):
            f = f * norm
            f = adj.T @ f
            f = f * norm
            rst = rst + f @ w + b
        x = jnp.maximum(rst, 0.0)
    return x


# --------------------------------- main -----------------------------------

if __name__ == "__main__":
    key = jax.random.PRNGKey(0)
    k_adj, k_feat, k_param, k_adj2, k_feat2, k_param2 = jax.random.split(key, 6)

    K = 2            # -> self.k = 3 inside ConvLayer (2 propagation hops)

    # ---- config A: resident-adjacency path --------------------------------
    N, IN_F, HID_F, OUT_F, LAYERS = 48, 8, 32, 16, 2
    adj = (jax.random.uniform(k_adj, (N, N)) > 0.6).astype(jnp.float32)
    feat = jax.random.normal(k_feat, (N, IN_F), jnp.float32)
    params = init_graph_embedding_params(k_param, IN_F, HID_F, OUT_F, LAYERS)
    ref = jax.block_until_ready(_reference_forward(adj, feat, params, k=K))

    # f32 hop operands: tight structural check against the reference ordering
    out32 = jax.block_until_ready(
        graph_embedding_forward(adj, feat, params, k=K,
                                hop_dtype=jnp.float32))
    assert out32.shape == (N, OUT_F) and out32.dtype == jnp.float32
    assert jnp.allclose(out32, ref, rtol=1e-4, atol=1e-4), \
        float(jnp.max(jnp.abs(out32 - ref)))

    # bf16 hop operands (default fast path): tolerance covers bf16 rounding
    out16 = jax.block_until_ready(
        graph_embedding_forward(adj, feat, params, k=K))
    assert out16.shape == (N, OUT_F)
    assert jnp.allclose(out16, ref, rtol=3e-2, atol=3e-2), \
        float(jnp.max(jnp.abs(out16 - ref)))

    # ---- config B: streamed adjacency (multiple column tiles) -------------
    N2, IN2, HID2, OUT2 = 200, 16, 64, 24
    adj2 = (jax.random.uniform(k_adj2, (N2, N2)) > 0.7).astype(jnp.float32)
    feat2 = jax.random.normal(k_feat2, (N2, IN2), jnp.float32)
    params2 = init_graph_embedding_params(k_param2, IN2, HID2, OUT2, 2)
    ref2 = jax.block_until_ready(_reference_forward(adj2, feat2, params2, k=K))
    out2 = jax.block_until_ready(
        graph_embedding_forward(adj2, feat2, params2, k=K,
                                hop_dtype=jnp.float32,
                                max_resident_nodes=128, col_tile=128))
    assert out2.shape == (N2, OUT2)
    assert jnp.allclose(out2, ref2, rtol=1e-4, atol=1e-4), \
        float(jnp.max(jnp.abs(out2 - ref2)))

    print("KERNEL_OK")
</pallas_src>

<mosaic_0001>
module attributes {stable_mosaic.version = 11 : i64} {
  func.func @_stack_kernel(%arg0: i32, %arg1: i32, %arg2: i32, %arg3: memref<128x128xf32, #tpu.memory_space<vmem>>, %arg4: memref<128x128xf32, #tpu.memory_space<vmem>>, %arg5: memref<1x128x128xf32, #tpu.memory_space<vmem>>, %arg6: memref<1x1x128xf32, #tpu.memory_space<vmem>>, %arg7: memref<128x128xf32, #tpu.memory_space<vmem>>, %arg8: memref<128x128xf32, #tpu.memory_space<vmem>>, %arg9: memref<128x128xf32, #tpu.memory_space<vmem>>, %arg10: memref<128x128xf32, #tpu.memory_space<vmem>>) attributes {dimension_semantics = [#tpu.dimension_semantics<arbitrary>, #tpu.dimension_semantics<arbitrary>, #tpu.dimension_semantics<arbitrary>], iteration_bounds = array<i64: 2, 2, 1>, scalar_prefetch = 0 : i64, scratch_operands = 3 : i64, tpu.core_type = #tpu.core_type<tc>, window_params = [{transform_indices = @transform_0, window_bounds = array<i64: 128, 128>}, {pipeline_mode = #tpu.pipeline_mode<synchronous>, transform_indices = @transform_1, window_bounds = array<i64: 128, 128>}, {transform_indices = @transform_2, window_bounds = array<i64: 1, 128, 128>}, {transform_indices = @transform_3, window_bounds = array<i64: 1, 1, 128>}, {pipeline_mode = #tpu.pipeline_mode<synchronous>, transform_indices = @transform_4, window_bounds = array<i64: 128, 128>}]} {
    %c0_i32 = arith.constant 0 : i32
    %0 = arith.cmpi eq, %arg0, %c0_i32 : i32
    %c0_i32_0 = arith.constant 0 : i32
    %1 = arith.cmpi eq, %arg1, %c0_i32_0 : i32
    %2 = arith.andi %0, %1 : i1
    %c0_i32_1 = arith.constant 0 : i32
    %3 = arith.cmpi eq, %arg2, %c0_i32_1 : i32
    %4 = arith.andi %2, %3 : i1
    %c0_i32_2 = arith.constant 0 : i32
    %5 = arith.cmpi eq, %arg1, %c0_i32_2 : i32
    %c0_i32_3 = arith.constant 0 : i32
    %6 = arith.cmpi eq, %arg2, %c0_i32_3 : i32
    %7 = arith.andi %5, %6 : i1
    %c0_i32_4 = arith.constant 0 : i32
    %8 = arith.cmpi eq, %arg2, %c0_i32_4 : i32
    %c1_i32 = arith.constant 1 : i32
    %9 = arith.cmpi eq, %arg1, %c1_i32 : i32
    %10 = arith.andi %8, %9 : i1
    %11 = arith.extui %4 : i1 to i32
    %c0_i32_5 = arith.constant 0 : i32
    %12 = arith.cmpi ne, %11, %c0_i32_5 : i32
    scf.if %12 {
      %c0_16 = arith.constant 0 : index
      %c0_17 = arith.constant 0 : index
      %27 = vector.load %arg4[%c0_16, %c0_17] : memref<128x128xf32, #tpu.memory_space<vmem>>, vector<128x128xf32>
      %c0_18 = arith.constant 0 : index
      %c0_19 = arith.constant 0 : index
      %28 = vector.load %arg7[%c0_18, %c0_19] : memref<128x128xf32, #tpu.memory_space<vmem>>, vector<128x128xf32>
      tpu.vector_store %arg7[%c0_18, %c0_19], %27 {strides = array<i32>} : memref<128x128xf32, #tpu.memory_space<vmem>>, vector<128x128xf32>,
    } else {
    }
    %13 = arith.extui %7 : i1 to i32
    %c0_i32_6 = arith.constant 0 : i32
    %14 = arith.cmpi ne, %13, %c0_i32_6 : i32
    scf.if %14 {
      %c0_16 = arith.constant 0 : index
      %c0_17 = arith.constant 0 : index
      %27 = vector.load %arg7[%c0_16, %c0_17] : memref<128x128xf32, #tpu.memory_space<vmem>>, vector<128x128xf32>
      %c0_18 = arith.constant 0 : index
      %c0_19 = arith.constant 0 : index
      %28 = vector.load %arg8[%c0_18, %c0_19] : memref<128x128xf32, #tpu.memory_space<vmem>>, vector<128x128xf32>
      tpu.vector_store %arg8[%c0_18, %c0_19], %27 {strides = array<i32>} : memref<128x128xf32, #tpu.memory_space<vmem>>, vector<128x128xf32>,
      %c0_20 = arith.constant 0 : index
      %c0_21 = arith.constant 0 : index
      %29 = vector.load %arg10[%c0_20, %c0_21] : memref<128x128xf32, #tpu.memory_space<vmem>>, vector<128x128xf32>
      tpu.vector_store %arg10[%c0_20, %c0_21], %27 {strides = array<i32>} : memref<128x128xf32, #tpu.memory_space<vmem>>, vector<128x128xf32>,
    } else {
    }
    %c0 = arith.constant 0 : index
    %c0_7 = arith.constant 0 : index
    %15 = vector.load %arg10[%c0, %c0_7] : memref<128x128xf32, #tpu.memory_space<vmem>>, vector<128x128xf32>
    %c0_8 = arith.constant 0 : index
    %c0_9 = arith.constant 0 : index
    %16 = vector.load %arg3[%c0_8, %c0_9] : memref<128x128xf32, #tpu.memory_space<vmem>>, vector<128x128xf32>
    %cst = arith.constant dense<0.000000e+00> : vector<128x128xf32>
    %17 = tpu.matmul %16, %15, %cst {dimension_numbers = #tpu.dot_dimension_numbers<[1], [0], [0], [1], [0, 0, 1, 1], [], []>} : vector<128x128xf32>, vector<128x128xf32>, vector<128x128xf32> -> vector<128x128xf32>
    %c0_10 = arith.constant 0 : index
    %c0_11 = arith.constant 0 : index
    %18 = vector.load %arg9[%c0_10, %c0_11] : memref<128x128xf32, #tpu.memory_space<vmem>>, vector<128x128xf32>
    tpu.vector_store %arg9[%c0_10, %c0_11], %17 {strides = array<i32>} : memref<128x128xf32, #tpu.memory_space<vmem>>, vector<128x128xf32>,
    %19 = arith.extui %8 : i1 to i32
    %c0_i32_12 = arith.constant 0 : i32
    %20 = arith.cmpi ne, %19, %c0_i32_12 : i32
    scf.if %20 {
      %c0_16 = arith.constant 0 : index
      %c0_17 = arith.constant 0 : index
      %27 = vector.load %arg8[%c0_16, %c0_17] : memref<128x128xf32, #tpu.memory_space<vmem>>, vector<128x128xf32>
      %c0_18 = arith.constant 0 : index
      %c0_19 = arith.constant 0 : index
      %28 = vector.load %arg9[%c0_18, %c0_19] : memref<128x128xf32, #tpu.memory_space<vmem>>, vector<128x128xf32>
      %29 = arith.addf %27, %28 : vector<128x128xf32>
      %c0_20 = arith.constant 0 : index
      %c0_21 = arith.constant 0 : index
      %30 = vector.load %arg8[%c0_20, %c0_21] : memref<128x128xf32, #tpu.memory_space<vmem>>, vector<128x128xf32>
      tpu.vector_store %arg8[%c0_20, %c0_21], %29 {strides = array<i32>} : memref<128x128xf32, #tpu.memory_space<vmem>>, vector<128x128xf32>,
    } else {
    }
    %c1_i32_13 = arith.constant 1 : i32
    %21 = arith.cmpi slt, %arg1, %c1_i32_13 : i32
    %22 = arith.andi %8, %21 : i1
    %23 = arith.extui %22 : i1 to i32
    %c0_i32_14 = arith.constant 0 : i32
    %24 = arith.cmpi ne, %23, %c0_i32_14 : i32
    scf.if %24 {
      %c0_16 = arith.constant 0 : index
      %c0_17 = arith.constant 0 : index
      %27 = vector.load %arg9[%c0_16, %c0_17] : memref<128x128xf32, #tpu.memory_space<vmem>>, vector<128x128xf32>
      %c0_18 = arith.constant 0 : index
      %c0_19 = arith.constant 0 : index
      %28 = vector.load %arg10[%c0_18, %c0_19] : memref<128x128xf32, #tpu.memory_space<vmem>>, vector<128x128xf32>
      tpu.vector_store %arg10[%c0_18, %c0_19], %27 {strides = array<i32>} : memref<128x128xf32, #tpu.memory_space<vmem>>, vector<128x128xf32>,
    } else {
    }
    %25 = arith.extui %10 : i1 to i32
    %c0_i32_15 = arith.constant 0 : i32
    %26 = arith.cmpi ne, %25, %c0_i32_15 : i32
    scf.if %26 {
      %c0_16 = arith.constant 0 : index
      %c0_17 = arith.constant 0 : index
      %27 = vector.load %arg8[%c0_16, %c0_17] : memref<128x128xf32, #tpu.memory_space<vmem>>, vector<128x128xf32>
      %c0_18 = arith.constant 0 : index
      %c0_19 = arith.constant 0 : index
      %c0_20 = arith.constant 0 : index
      %28 = vector.load %arg5[%c0_18, %c0_19, %c0_20] : memref<1x128x128xf32, #tpu.memory_space<vmem>>, vector<1x128x128xf32>
      %29 = vector.shape_cast %28 : vector<1x128x128xf32> to vector<128x128xf32>
      %cst_21 = arith.constant dense<0.000000e+00> : vector<128x128xf32>
      %30 = tpu.matmul %27, %29, %cst_21 {dimension_numbers = #tpu.dot_dimension_numbers<[1], [0], [0], [1], [0, 0, 1, 1], [], []>} : vector<128x128xf32>, vector<128x128xf32>, vector<128x128xf32> -> vector<128x128xf32>
      %c0_22 = arith.constant 0 : index
      %c0_23 = arith.constant 0 : index
      %c0_24 = arith.constant 0 : index
      %31 = vector.load %arg6[%c0_22, %c0_23, %c0_24] : memref<1x1x128xf32, #tpu.memory_space<vmem>>, vector<1x1x128xf32>
      %32 = vector.shape_cast %31 : vector<1x1x128xf32> to vector<1x128xf32>
      %cst_25 = arith.constant 3.000000e+00 : f32
      %33 = vector.broadcast %cst_25 : f32 to vector<1x128xf32>
      %34 = arith.mulf %33, %32 : vector<1x128xf32>
      %35 = vector.broadcast %34 : vector<1x128xf32> to vector<128x128xf32>
      %36 = arith.addf %30, %35 : vector<128x128xf32>
      %cst_26 = arith.constant 0.000000e+00 : f32
      %37 = vector.broadcast %cst_26 : f32 to vector<128x128xf32>
      %38 = arith.maximumf %36, %37 : vector<128x128xf32>
      %c0_27 = arith.constant 0 : index
      %c0_28 = arith.constant 0 : index
      %39 = vector.load %arg7[%c0_27, %c0_28] : memref<128x128xf32, #tpu.memory_space<vmem>>, vector<128x128xf32>
      tpu.vector_store %arg7[%c0_27, %c0_28], %38 {strides = array<i32>} : memref<128x128xf32, #tpu.memory_space<vmem>>, vector<128x128xf32>,
    } else {
    }
    return
  }
  func.func @transform_0(%arg0: i32, %arg1: i32, %arg2: i32) -> (i32, i32) {
    %c0_i32 = arith.constant 0 : i32
    %c0_i32_0 = arith.constant 0 : i32
    return %c0_i32, %arg2 : i32, i32
  }
  func.func @transform_1(%arg0: i32, %arg1: i32, %arg2: i32) -> (i32, i32) {
    %c0_i32 = arith.constant 0 : i32
    %c0_i32_0 = arith.constant 0 : i32
    %c0_i32_1 = arith.constant 0 : i32
    return %c0_i32, %c0_i32_0 : i32, i32
  }
  func.func @transform_2(%arg0: i32, %arg1: i32, %arg2: i32) -> (i32, i32, i32) {
    %c0_i32 = arith.constant 0 : i32
    %c0_i32_0 = arith.constant 0 : i32
    %c0_i32_1 = arith.constant 0 : i32
    return %arg0, %c0_i32, %c0_i32_0 : i32, i32, i32
  }
  func.func @transform_3(%arg0: i32, %arg1: i32, %arg2: i32) -> (i32, i32, i32) {
    %c0_i32 = arith.constant 0 : i32
    %c0_i32_0 = arith.constant 0 : i32
    %c0_i32_1 = arith.constant 0 : i32
    return %arg0, %c0_i32, %c0_i32_0 : i32, i32, i32
  }
  func.func @transform_4(%arg0: i32, %arg1: i32, %arg2: i32) -> (i32, i32) {
    %c0_i32 = arith.constant 0 : i32
    %c0_i32_0 = arith.constant 0 : i32
    %c0_i32_1 = arith.constant 0 : i32
    return %c0_i32, %c0_i32_0 : i32, i32
  }
}

</mosaic_0001>

<bundles_post_ra>
// kernel: tpu_custom_call.1
= control target key start
LH: loop header
LB: loop body
LE: loop exit
PB: predicated region body
PF: predicated region fallthrough
CT: control target
= control target key end

     0   :  { %9 = vsyncpa [#allocation6], 0  ;;  %s1912_s0 = inlined_call_operand.hbm [shape: f32[128,128], index: 0, kind: input, shape index: {}]   ;;  %s1913_s1 = inlined_call_operand.hbm [shape: f32[128,128], index: 1, kind: input, shape index: {}]   ;;  %s1914_s2 = inlined_call_operand.hbm [shape: f32[2,128,128], index: 2, kind: input, shape index: {}]   ;;  %s1915_s3 = inlined_call_operand.vmem [shape: f32[2,1,128], index: 3, kind: input, shape index: {}]   ;;  %s1916_s4 = inlined_call_operand.hbm [shape: f32[128,128], index: 4, kind: output, shape index: {}]  }
   0x1   :  { %10 = vsyncpa [#allocation9], 0 }
   0x2   :  { %11 = vsyncpa [#allocation7], 0  ;;  %s1611_s15 = smov 0   ;;  %s1613_s16 = smov 0  }
   0x3   :  { %s1615_s17 = smov 0   ;;  %s1617_s18 = smov 0  }
   0x4   :  { %s1619_s19 = smov 0   ;;  %s1621_s20 = smov 0  }
   0x5   :  { %s1623_s21 = smov 0   ;;  %s1625_s22 = smov 0  }
   0x6 LB: > { %s1650_s23 = sadd.s32 4294967295, %s1576_s22   ;;  %p97_p0 = scmp.ne.s32.totalorder %s1556_s17, %s1552_s16  ;;  %s1576_s22 = sphi %s1625_s22, %s17_s22   ;;  %s1572_s21 = sphi %s1623_s21, %s1940_s21   ;;  %s1568_s20 = sphi %s1621_s20, %s1939_s20   ;;  %s1564_s19 = sphi %s1619_s19, %s1938_s19   ;;  %s1560_s18 = sphi %s1617_s18, %s1937_s18   ;;  %s1556_s17 = sphi %s1615_s17, %s1936_s17   ;;  %s1552_s16 = sphi %s1613_s16, %s1935_s16   ;;  %s1548_s15 = sphi %s1611_s15, %s1934_s15  }
   0x7   : > { %p98_p1 = scmp.eq.s32.totalorder %s1576_s22, 0  ;;  %p103_p2 = scmp.ne.s32.totalorder %s1552_s16, %s1548_s15 }
   0x8   : > { %p1917_p3 = scmp.eq.s32.totalorder %s1650_s23, 0  ;;  %p988_p5 = scmp.ge.s32.totalorder %s1576_s22, 1 }
   0x9   : > { %p99_p4 = por %p98_p1, %p97_p0  ;;  %p161_p7 = scmp.lt.s32.totalorder %s1576_s22, 5 }
   0xa   : > { %p1660_p6 = por %p1917_p3, %p103_p2  ;;  %s1578_s26 = smov [#allocation5]  }
   0xb   : > { %p1665_p8 = pnand %p988_p5, %p161_p7  ;;  %s175_s27 = sshll.u32 %s1578_s26, 4  ;;  %s1669_s27 = int_to_ptr.vmem [resolvable:$true] %s175_s27 }
   0xc   : > { %s1921_s24 = scalar_select %p1660_p6, 1, 0 }
   0xd   : > { %s1922_s25 = scalar_select %p1665_p8, 1, 0 }
   0xe   : > { %p1297_p9 = pneg %p1665_p8  ;;  %p1310_p10 = scmp.lt.s32.totalorder %s1576_s22, 4 }
   0xf   : > { %s1579_s30 = smov [#allocation8]   ;;  %s1386_s8 = scalar_lea.hbm %s1912_s0, 2048 }
  0x10   : > { %p1676_p11 = pnand %p1297_p9, %p1917_p3  ;;  %p1680_p12 = pnand %p1310_p10, %p99_p4 }
  0x11   : > { %s188_s5 = sshll.u32 %s1579_s30, 4  ;;  %p1387_p13 = scmp.ne.s32.totalorder %s1912_s0, %s1386_s8  ;;  %s1684_s5 = int_to_ptr.vmem [resolvable:$true] %s188_s5 }
  0x12   : > { %p1388_p0 = pneg %p1676_p11  ;;  %p1393_p4 = scmp.lt.u32.totalorder %s1386_s8, %s1912_s0 }
  0x14   : > { %p1389_p1 = pnand %p1388_p0, %p1387_p13 }
  0x16   : > { %p1390_p2 = pneg %p1389_p1 }
  0x18   : > { %p1395_p5 = pnand %p1393_p4, %p1390_p2 }
  0x1a   : > { %1398 = shalt.err (!%p1395_p5)
}
  0x1b   : > { %s1399_s13 = scalar_lea.vmem %s1669_s27, 2048  ;;  %p1407_p3 = scmp.lt.s32.totalorder %s1669_s27, %s1669_s27 }
  0x1c   : > { %p1400_p7 = scmp.ne.s32.totalorder %s1669_s27, %s1399_s13  ;;  %p1408_p13 = scmp.lt.s32.totalorder %s1399_s13, %s1399_s13 }
  0x1e   : > { %p1402_p9 = pnand %p1400_p7, %p1388_p0  ;;  %p1409_p1 = por %p1408_p13, %p1407_p3 }
  0x20   : > { %p1403_p10 = pneg %p1402_p9 }
  0x22   : > { %p1410_p6 = pnand %p1409_p1, %p1403_p10 }
  0x24   : > { %1413 = shalt.err (!%p1410_p6)
}
  0x25   : > { %s1919_s14 = smov 128   ;;  %s1581_s15 = smov 8  }
  0x26   : > { %1300 = dma.hbm_to_vmem [thread:$0]  (!%p1676_p11), %s1912_s0, 2048, %s1669_s27, [#allocation6], %s1919_s14, %s1919_s14, %s1581_s15  }
  0x27   : > { %s1414_s8 = scalar_lea.hbm %s1913_s1, 2048 }
  0x28   : > { %p1415_p3 = scmp.ne.s32.totalorder %s1913_s1, %s1414_s8  ;;  %p1421_p4 = scmp.lt.u32.totalorder %s1414_s8, %s1913_s1 }
  0x2a   : > { %p1417_p6 = pnand %p1415_p3, %p1388_p0 }
  0x2c   : > { %p1418_p2 = pneg %p1417_p6 }
  0x2e   : > { %p1423_p5 = pnand %p1421_p4, %p1418_p2 }
  0x30   : > { %1426 = shalt.err (!%p1423_p5)
}
  0x31   : > { %s1427_s27 = scalar_lea.vmem %s1684_s5, 2048  ;;  %p1435_p13 = scmp.lt.s32.totalorder %s1684_s5, %s1684_s5 }
  0x32   : > { %p1428_p7 = scmp.ne.s32.totalorder %s1684_s5, %s1427_s27  ;;  %p1436_p1 = scmp.lt.s32.totalorder %s1427_s27, %s1427_s27 }
  0x34   : > { %p1430_p9 = pnand %p1428_p7, %p1388_p0  ;;  %p1437_p3 = por %p1436_p1, %p1435_p13 }
  0x36   : > { %p1431_p10 = pneg %p1430_p9 }
  0x38   : > { %p1438_p6 = pnand %p1437_p3, %p1431_p10 }
  0x3a   : > { %1441 = shalt.err (!%p1438_p6)
}
  0x3b   : > { %1303 = dma.hbm_to_vmem [thread:$0]  (!%p1676_p11), %s1913_s1, 2048, %s1684_s5, [#allocation9], %s1919_s14, %s1919_s14, %s1581_s15  }
  0x3c   : > { %s32_s30 = sadd.s32 1, %s1568_s20  ;;  %s36_s6 = sadd.s32 1, %s1572_s21 }
  0x3d   : > { %p34_p0 = scmp.ge.s32.totalorder %s32_s30, 2  ;;  %s202_s28 = sand.u32 1, %s1576_s22  }
  0x3e   : > { %s204_s7 = sand.u32 1, %s1556_s17   ;;  %s1007_s9 = sshll.u32 %s1572_s21, 11 }
  0x3f   : > { %s1942_s30 = smov (%p34_p0, %s32_s30), 0  ;;  %s1944_s6 = smov (!%p34_p0, %s36_s6), %s1572_s21 }
  0x40   : > { %s992_s8 = sshll.u32 %s204_s7, 7  ;;  %p38_p2 = scmp.ge.s32.totalorder %s1944_s6, 2 }
  0x41   : > { %s206_s10 = scalar_lea.vmem [#allocation10], %s992_s8  ;;  %s1757_s27 = scalar_lea.hbm %s1914_s2, %s1007_s9 }
  0x42   : > { %s213_s11 = sshll.u32 %s206_s10, 4  ;;  %s1946_s6 = smov (%p38_p2, %s1944_s6), 0  ;;  %s1759_s11 = int_to_ptr.vmem [resolvable:$true] %s213_s11 }
  0x43   : > { %s87_s26 = ssub.s32 %s1572_s21, %s1946_s6  ;;  %s1768_s8 = scalar_lea.sflag [#allocation6], %s202_s28 }
  0x44   : > { %p1764_p11 = scmp.eq.s32.totalorder %s87_s26, 0  ;;  %s1442_s10 = scalar_lea.hbm %s1757_s27, 2048 }
  0x45   : > { %p1443_p4 = scmp.ne.s32.totalorder %s1757_s27, %s1442_s10  ;;  %p1444_p5 = pneg %p1680_p12 }
  0x46   : > { %s1447_s12 = scalar_lea.hbm %s1914_s2, 4096  ;;  %p1448_p10 = scmp.lt.u32.totalorder %s1757_s27, %s1914_s2 }
  0x47   : > { %p1445_p7 = pnand %p1444_p5, %p1443_p4  ;;  %p1449_p13 = scmp.lt.u32.totalorder %s1447_s12, %s1442_s10 }
  0x48   : > { %p1451_p3 = scmp.lt.u32.totalorder %s1442_s10, %s1757_s27 }
  0x49   : > { %p1446_p9 = pneg %p1445_p7  ;;  %p1450_p1 = por %p1449_p13, %p1448_p10 }
  0x4b   : > { %p1452_p6 = por %p1451_p3, %p1450_p1 }
  0x4d   : > { %p1453_p0 = pnand %p1452_p6, %p1446_p9 }
  0x4f   : > { %1456 = shalt.err (!%p1453_p0)
}
  0x50   : > { %s1457_s28 = scalar_lea.vmem %s1759_s11, 2048  ;;  %s1582_s26 = smov [#allocation10]  }
  0x51   : > { %p1458_p2 = scmp.ne.s32.totalorder %s1759_s11, %s1457_s28  ;;  %s1462_s9 = sshll.u32 %s1582_s26, 4  ;;  %s1463_s9 = int_to_ptr.vmem [resolvable:$false] %s1462_s9 }
  0x52   : > { %s1464_s14 = scalar_lea.vmem %s1463_s9, 4096  ;;  %p1465_p8 = scmp.lt.s32.totalorder %s1759_s11, %s1463_s9 }
  0x53   : > { %p1460_p4 = pnand %p1458_p2, %p1444_p5  ;;  %p1466_p10 = scmp.lt.s32.totalorder %s1464_s14, %s1457_s28 }
  0x55   : > { %p1461_p7 = pneg %p1460_p4  ;;  %p1467_p13 = por %p1466_p10, %p1465_p8 }
  0x57   : > { %p1468_p1 = pnand %p1467_p13, %p1461_p7 }
  0x59   : > { %1471 = shalt.err (!%p1468_p1)
}
  0x5a   : > { %s1926_s13 = smov 128   ;;  %s1927_s10 = sadd.s32 1, %s1556_s17 }
  0x5b   : > { %1307 = dma.hbm_to_vmem [thread:$0]  (!%p1680_p12), %s1757_s27, 2048, %s1759_s11, %s1768_s8, %s1926_s13, %s1926_s13, %s1581_s15  }
  0x5c   : > { %s1804_s5 = scalar_select %p1764_p11, %s1556_s17, %s1927_s10  }
  0x5d   : > { %p1928_p8 = scmp.ne.s32.totalorder %s1922_s25, 0 }
  0x5e   : > { %p1929_p5 = scmp.eq.s32.totalorder (!%p1928_p8), %s1650_s23, 0 }
  0x5f   : > { %231 = sbr.rel (%p1928_p8) target bundleno = 705 (0x2c1), region = 36 }
  0x66   : > { %1531 = dma.done.wait (%p1929_p5), [#allocation6], 2048   ;;  %p1930_p9 = pmov %p1929_p5 }
  0x67   : > { %p1931_p3 = pmov %p1929_p5 }
  0x68   : > { %1533 = vsyncadd (%p1930_p9), [#allocation6], 4294965248 }
  0x69   : > { %1535 = dma.done.wait (%p1931_p3), [#allocation9], 2048   ;;  %p1932_p6 = pmov %p1931_p3 }
  0x6a   : > { %s241_s29 = sand.u32 1, %s1650_s23   ;;  %s243_s15 = sand.u32 1, %s1552_s16  }
  0x6b   : > { %1537 = vsyncadd (%p1932_p6), [#allocation9], 4294965248  ;;  %s998_s11 = sshll.u32 %s243_s15, 7  ;;  %s242_s25 = scalar_lea.sflag [#allocation6], %s241_s29 }
  0x6c   : > { %s1818_s27 = scalar_lea.vmem [#allocation10], %s998_s11  ;;  %p1933_p12 = scmp.ne.s32.totalorder %s1921_s24, 0 }
  0x6e   : > { %1539 = dma.done.wait (%p1933_p12), %s242_s25, 2048  }
  0x6f   : > { %1541 = vsyncadd (%p1933_p12), %s242_s25, 4294965248  ;;  %p268_p11 = scmp.lt.s32.totalorder %s1564_s19, 1  ;;  %p271_p0 = scmp.eq.s32.totalorder %s1564_s19, 0 }
  0x70   : > { %p272_p2 = scmp.eq.s32.totalorder %s1560_s18, 0  ;;  %p280_p4 = scmp.eq.s32.totalorder %s1560_s18, 1 }
  0x71   : > { %s1948_s19 = smov (!%p268_p11, %s1564_s19), 1 }
  0x72   : > { %p273_p7 = pnand %p272_p2, %p271_p0  ;;  %s270_s24 = scalar_lea.vmem %s1915_s3, %s1948_s19 }
  0x73   : > { %v285_v0 = vld [vmem:[#allocation8] sm:$0xff] (!%p273_p7)  ;;  %v286_v1 = vld [vmem:[#allocation8 + $0x8] sm:$0xff] (!%p273_p7)  ;;  %v287_v2 = vld [vmem:[#allocation8 + $0x10] sm:$0xff] (!%p273_p7) }
  0x74   : > { %284 = sbr.rel (%p273_p7) target bundleno = 124 (0x7c), region = 52  ;;  %301 = vst [vmem:[#allocation11] sm:$0xff] (!%p273_p7), %v285_v0  ;;  %302 = vst [vmem:[#allocation11 + $0x8] sm:$0xff] (!%p273_p7), %v286_v1  ;;  %v288_v3 = vld [vmem:[#allocation8 + $0x18] sm:$0xff] (!%p273_p7)  ;;  %v289_v4 = vld [vmem:[#allocation8 + $0x20] sm:$0xff] (!%p273_p7) }
  0x75   : > { %303 = vst [vmem:[#allocation11 + $0x10] sm:$0xff] (!%p273_p7), %v287_v2  ;;  %v290_v5 = vld [vmem:[#allocation8 + $0x28] sm:$0xff] (!%p273_p7)  ;;  %304 = vst [vmem:[#allocation11 + $0x18] sm:$0xff] (!%p273_p7), %v288_v3  ;;  %v291_v6 = vld [vmem:[#allocation8 + $0x30] sm:$0xff] (!%p273_p7) }
  0x76   : > { %305 = vst [vmem:[#allocation11 + $0x20] sm:$0xff] (!%p273_p7), %v289_v4  ;;  %306 = vst [vmem:[#allocation11 + $0x28] sm:$0xff] (!%p273_p7), %v290_v5  ;;  %v292_v7 = vld [vmem:[#allocation8 + $0x38] sm:$0xff] (!%p273_p7)  ;;  %v293_v8 = vld [vmem:[#allocation8 + $0x40] sm:$0xff] (!%p273_p7) }
  0x77   : > { %307 = vst [vmem:[#allocation11 + $0x30] sm:$0xff] (!%p273_p7), %v291_v6  ;;  %308 = vst [vmem:[#allocation11 + $0x38] sm:$0xff] (!%p273_p7), %v292_v7  ;;  %v294_v9 = vld [vmem:[#allocation8 + $0x48] sm:$0xff] (!%p273_p7)  ;;  %v295_v10 = vld [vmem:[#allocation8 + $0x50] sm:$0xff] (!%p273_p7) }
  0x78   : > { %309 = vst [vmem:[#allocation11 + $0x40] sm:$0xff] (!%p273_p7), %v293_v8  ;;  %v296_v11 = vld [vmem:[#allocation8 + $0x58] sm:$0xff] (!%p273_p7)  ;;  %310 = vst [vmem:[#allocation11 + $0x48] sm:$0xff] (!%p273_p7), %v294_v9  ;;  %v297_v12 = vld [vmem:[#allocation8 + $0x60] sm:$0xff] (!%p273_p7) }
  0x79   : > { %311 = vst [vmem:[#allocation11 + $0x50] sm:$0xff] (!%p273_p7), %v295_v10  ;;  %312 = vst [vmem:[#allocation11 + $0x58] sm:$0xff] (!%p273_p7), %v296_v11  ;;  %v298_v13 = vld [vmem:[#allocation8 + $0x68] sm:$0xff] (!%p273_p7)  ;;  %v299_v14 = vld [vmem:[#allocation8 + $0x70] sm:$0xff] (!%p273_p7) }
  0x7a   : > { %313 = vst [vmem:[#allocation11 + $0x60] sm:$0xff] (!%p273_p7), %v297_v12  ;;  %314 = vst [vmem:[#allocation11 + $0x68] sm:$0xff] (!%p273_p7), %v298_v13  ;;  %v300_v15 = vld [vmem:[#allocation8 + $0x78] sm:$0xff] (!%p273_p7) }
  0x7b   : > { %315 = vst [vmem:[#allocation11 + $0x70] sm:$0xff] %v299_v14  ;;  %316 = vst [vmem:[#allocation11 + $0x78] sm:$0xff] %v300_v15 }
  0x7c PF: > { %318 = sbr.rel (!%p272_p2) target bundleno = 141 (0x8d), region = 56  ;;  %v319_v16 = vld [vmem:[#allocation11] sm:$0xff] (%p272_p2)  ;;  %v320_v17 = vld [vmem:[#allocation11 + $0x8] sm:$0xff] (%p272_p2) }
  0x7d   : > { %v321_v18 = vld [vmem:[#allocation11 + $0x10] sm:$0xff] (%p272_p2)  ;;  %335 = vst [vmem:[#allocation2] sm:$0xff] (%p272_p2), %v319_v16  ;;  %351 = vst [vmem:[#allocation4] sm:$0xff] (%p272_p2), %v319_v16  ;;  %v322_v19 = vld [vmem:[#allocation11 + $0x18] sm:$0xff] (%p272_p2) }
  0x7e   : > { %336 = vst [vmem:[#allocation2 + $0x8] sm:$0xff] (%p272_p2), %v320_v17  ;;  %352 = vst [vmem:[#allocation4 + $0x8] sm:$0xff] (%p272_p2), %v320_v17  ;;  %v323_v20 = vld [vmem:[#allocation11 + $0x20] sm:$0xff] (%p272_p2)  ;;  %v324_v21 = vld [vmem:[#allocation11 + $0x28] sm:$0xff] (%p272_p2) }
  0x7f   : > { %337 = vst [vmem:[#allocation2 + $0x10] sm:$0xff] (%p272_p2), %v321_v18  ;;  %353 = vst [vmem:[#allocation4 + $0x10] sm:$0xff] (%p272_p2), %v321_v18  ;;  %v325_v22 = vld [vmem:[#allocation11 + $0x30] sm:$0xff] (%p272_p2)  ;;  %v326_v23 = vld [vmem:[#allocation11 + $0x38] sm:$0xff] (%p272_p2) }
  0x80   : > { %338 = vst [vmem:[#allocation2 + $0x18] sm:$0xff] (%p272_p2), %v322_v19  ;;  %354 = vst [vmem:[#allocation4 + $0x18] sm:$0xff] (%p272_p2), %v322_v19  ;;  %v327_v24 = vld [vmem:[#allocation11 + $0x40] sm:$0xff] (%p272_p2)  ;;  %v328_v25 = vld [vmem:[#allocation11 + $0x48] sm:$0xff] (%p272_p2) }
  0x81   : > { %339 = vst [vmem:[#allocation2 + $0x20] sm:$0xff] (%p272_p2), %v323_v20  ;;  %355 = vst [vmem:[#allocation4 + $0x20] sm:$0xff] (%p272_p2), %v323_v20  ;;  %v329_v26 = vld [vmem:[#allocation11 + $0x50] sm:$0xff] (%p272_p2)  ;;  %v330_v27 = vld [vmem:[#allocation11 + $0x58] sm:$0xff] (%p272_p2) }
  0x82   : > { %340 = vst [vmem:[#allocation2 + $0x28] sm:$0xff] (%p272_p2), %v324_v21  ;;  %356 = vst [vmem:[#allocation4 + $0x28] sm:$0xff] (%p272_p2), %v324_v21  ;;  %v331_v28 = vld [vmem:[#allocation11 + $0x60] sm:$0xff] (%p272_p2)  ;;  %v332_v29 = vld [vmem:[#allocation11 + $0x68] sm:$0xff] (%p272_p2) }
  0x83   : > { %341 = vst [vmem:[#allocation2 + $0x30] sm:$0xff] %v325_v22  ;;  %357 = vst [vmem:[#allocation4 + $0x30] sm:$0xff] %v325_v22  ;;  %v333_v30 = vld [vmem:[#allocation11 + $0x70] sm:$0xff]  ;;  %v334_v31 = vld [vmem:[#allocation11 + $0x78] sm:$0xff] }
  0x84   : > { %342 = vst [vmem:[#allocation2 + $0x38] sm:$0xff] %v326_v23  ;;  %358 = vst [vmem:[#allocation4 + $0x38] sm:$0xff] %v326_v23 }
  0x85   : > { %343 = vst [vmem:[#allocation2 + $0x40] sm:$0xff] %v327_v24  ;;  %359 = vst [vmem:[#allocation4 + $0x40] sm:$0xff] %v327_v24 }
  0x86   : > { %344 = vst [vmem:[#allocation2 + $0x48] sm:$0xff] %v328_v25  ;;  %360 = vst [vmem:[#allocation4 + $0x48] sm:$0xff] %v328_v25 }
  0x87   : > { %345 = vst [vmem:[#allocation2 + $0x50] sm:$0xff] %v329_v26  ;;  %361 = vst [vmem:[#allocation4 + $0x50] sm:$0xff] %v329_v26 }
  0x88   : > { %346 = vst [vmem:[#allocation2 + $0x58] sm:$0xff] %v330_v27  ;;  %362 = vst [vmem:[#allocation4 + $0x58] sm:$0xff] %v330_v27 }
  0x89   : > { %347 = vst [vmem:[#allocation2 + $0x60] sm:$0xff] %v331_v28  ;;  %363 = vst [vmem:[#allocation4 + $0x60] sm:$0xff] %v331_v28 }
  0x8a   : > { %348 = vst [vmem:[#allocation2 + $0x68] sm:$0xff] %v332_v29  ;;  %364 = vst [vmem:[#allocation4 + $0x68] sm:$0xff] %v332_v29 }
  0x8b   : > { %349 = vst [vmem:[#allocation2 + $0x70] sm:$0xff] %v333_v30  ;;  %365 = vst [vmem:[#allocation4 + $0x70] sm:$0xff] %v333_v30 }
  0x8c   : > { %350 = vst [vmem:[#allocation2 + $0x78] sm:$0xff] %v334_v31  ;;  %366 = vst [vmem:[#allocation4 + $0x78] sm:$0xff] %v334_v31 }
  0x8d PF: > { %v383_v41 = vld [vmem:[#allocation5] sm:$0xff]  ;;  %v374_v44 = vld [vmem:[#allocation4 + $0x38] sm:$0xff]  ;;  %v376_v47 = vld [vmem:[#allocation4 + $0x48] sm:$0xff]  ;;  %p627_p10 = scmp.lt.s32.totalorder %s1560_s18, 1 }
  0x8e   : > { %v367_v32 = vld [vmem:[#allocation4] sm:$0xff]  ;;  %1107 = vmatprep.mubr.f32.mxu0 %v383_v41  ;;  %v377_v49 = vld [vmem:[#allocation4 + $0x50] sm:$0xff]  ;;  %v384_v58 = vld [vmem:[#allocation5 + $0x8] sm:$0xff] }
  0x8f   : > { %v368_v33 = vld [vmem:[#allocation4 + $0x8] sm:$0xff]  ;;  %v391_v42 = vld [vmem:[#allocation5 + $0x40] sm:$0xff]  ;;  %v378_v50 = vld [vmem:[#allocation4 + $0x58] sm:$0xff] }
  0x90   : > { %v369_v34 = vld [vmem:[#allocation4 + $0x10] sm:$0xff]  ;;  %v1187_v35 = vpack.c.bf16 %v368_v33, %v367_v32  ;;  %1119 = vmatprep.mubr.f32.mxu1 %v391_v42  ;;  %v375_v46 = vld [vmem:[#allocation4 + $0x40] sm:$0xff]  ;;  %v1207_v51 = vpack.c.bf16 %v378_v50, %v377_v49  ;;  %v392_v59 = vld [vmem:[#allocation5 + $0x48] sm:$0xff] }
  0x91   : > { %v370_v36 = vld [vmem:[#allocation4 + $0x18] sm:$0xff]  ;;  %v1203_v48 = vpack.c.bf16 %v376_v47, %v375_v46  ;;  %v379_v52 = vld [vmem:[#allocation4 + $0x60] sm:$0xff]  ;;  %v380_v53 = vld [vmem:[#allocation4 + $0x68] sm:$0xff] }
  0x92   : > { %v1191_v37 = vpack.c.bf16 %v370_v36, %v369_v34  ;;  %v371_v38 = vld [vmem:[#allocation4 + $0x20] sm:$0xff]  ;;  %1188 = vmatprep.subr.bf16.mxu0 %v1187_v35  ;;  %1251 = vmatprep.subr.bf16.mxu1 %v1187_v35  ;;  %v1211_v54 = vpack.c.bf16 %v380_v53, %v379_v52  ;;  %v381_v55 = vld [vmem:[#allocation4 + $0x70] sm:$0xff]  ;;  %v386_v62 = vld [vmem:[#allocation5 + $0x18] sm:$0xff] }
  0x93   : > { %v372_v39 = vld [vmem:[#allocation4 + $0x28] sm:$0xff]  ;;  %1190 = vmatpush3.bf16.msra.mxu0 %v1187_v35  ;;  %1259 = vmatpush3.bf16.msra.mxu1 %v1187_v35  ;;  %v382_v56 = vld [vmem:[#allocation4 + $0x78] sm:$0xff]  ;;  %v385_v60 = vld [vmem:[#allocation5 + $0x10] sm:$0xff] }
  0x94   : > { %1192 = vmatprep.subr.bf16.mxu0 %v1191_v37  ;;  %1252 = vmatprep.subr.bf16.mxu1 %v1191_v37  ;;  %v1195_v40 = vpack.c.bf16 %v372_v39, %v371_v38  ;;  %v373_v43 = vld [vmem:[#allocation4 + $0x30] sm:$0xff]  ;;  %v1215_v57 = vpack.c.bf16 %v382_v56, %v381_v55  ;;  %v394_v63 = vld [vmem:[#allocation5 + $0x58] sm:$0xff]  ;;  %v387_v0 = vld [vmem:[#allocation5 + $0x20] sm:$0xff] }
  0x95   : > { %v1199_v45 = vpack.c.bf16 %v374_v44, %v373_v43  ;;  %v393_v61 = vld [vmem:[#allocation5 + $0x50] sm:$0xff]  ;;  %v395_v1 = vld [vmem:[#allocation5 + $0x60] sm:$0xff]  ;;  %v388_v2 = vld [vmem:[#allocation5 + $0x28] sm:$0xff] }
  0x96   : > { %v396_v3 = vld [vmem:[#allocation5 + $0x68] sm:$0xff]  ;;  %v389_v4 = vld [vmem:[#allocation5 + $0x30] sm:$0xff]  ;;  %v390_v6 = vld [vmem:[#allocation5 + $0x38] sm:$0xff] }
  0x97   : > { %1194 = vmatpush3.bf16.msra.mxu0 %v1191_v37  ;;  %1260 = vmatpush3.bf16.msra.mxu1 %v1191_v37  ;;  %v397_v5 = vld [vmem:[#allocation5 + $0x70] sm:$0xff]  ;;  %v398_v7 = vld [vmem:[#allocation5 + $0x78] sm:$0xff]  ;;  %v564_v8 = vld [vmem:[#allocation2 + $0x8] sm:$0xff] }
  0x98   : > { %1196 = vmatprep.subr.bf16.mxu0 %v1195_v40  ;;  %1253 = vmatprep.subr.bf16.mxu1 %v1195_v40  ;;  %v572_v9 = vld [vmem:[#allocation2 + $0x48] sm:$0xff]  ;;  %v563_v10 = vld [vmem:[#allocation2] sm:$0xff]  ;;  %v566_v20 = vld [vmem:[#allocation2 + $0x18] sm:$0xff] }
  0x99   : > { %v571_v11 = vld [vmem:[#allocation2 + $0x40] sm:$0xff]  ;;  %v574_v21 = vld [vmem:[#allocation2 + $0x58] sm:$0xff]  ;;  %v565_v22 = vld [vmem:[#allocation2 + $0x10] sm:$0xff] }
  0x9a   : > { %v573_v23 = vld [vmem:[#allocation2 + $0x50] sm:$0xff]  ;;  %v568_v32 = vld [vmem:[#allocation2 + $0x28] sm:$0xff]  ;;  %v567_v34 = vld [vmem:[#allocation2 + $0x20] sm:$0xff] }
  0x9b   : > { %1198 = vmatpush3.bf16.msra.mxu0 %v1195_v40  ;;  %1261 = vmatpush3.bf16.msra.mxu1 %v1195_v40  ;;  %v576_v33 = vld [vmem:[#allocation2 + $0x68] sm:$0xff]  ;;  %v575_v35 = vld [vmem:[#allocation2 + $0x60] sm:$0xff]  ;;  %v570_v44 = vld [vmem:[#allocation2 + $0x38] sm:$0xff] }
  0x9c   : > { %1200 = vmatprep.subr.bf16.mxu0 %v1199_v45  ;;  %1254 = vmatprep.subr.bf16.mxu1 %v1199_v45  ;;  %v569_v46 = vld [vmem:[#allocation2 + $0x30] sm:$0xff] }
  0x9d   : > { %v577_v47 = vld [vmem:[#allocation2 + $0x70] sm:$0xff] }
  0x9f   : > { %1202 = vmatpush3.bf16.msra.mxu0 %v1199_v45  ;;  %1262 = vmatpush3.bf16.msra.mxu1 %v1199_v45  ;;  %v578_v45 = vld [vmem:[#allocation2 + $0x78] sm:$0xff] }
  0xa0   : > { %1204 = vmatprep.subr.bf16.mxu0 %v1203_v48  ;;  %1255 = vmatprep.subr.bf16.mxu1 %v1203_v48 }
  0xa3   : > { %1206 = vmatpush3.bf16.msra.mxu0 %v1203_v48  ;;  %1263 = vmatpush3.bf16.msra.mxu1 %v1203_v48 }
  0xa4   : > { %1208 = vmatprep.subr.bf16.mxu0 %v1207_v51  ;;  %1256 = vmatprep.subr.bf16.mxu1 %v1207_v51 }
  0xa7   : > { %1210 = vmatpush3.bf16.msra.mxu0 %v1207_v51  ;;  %1264 = vmatpush3.bf16.msra.mxu1 %v1207_v51 }
  0xa8   : > { %1212 = vmatprep.subr.bf16.mxu0 %v1211_v54  ;;  %1257 = vmatprep.subr.bf16.mxu1 %v1211_v54 }
  0xab   : > { %1214 = vmatpush3.bf16.msra.mxu0 %v1211_v54  ;;  %1265 = vmatpush3.bf16.msra.mxu1 %v1211_v54 }
  0xac   : > { %1216 = vmatprep.subr.bf16.mxu0 %v1215_v57  ;;  %1258 = vmatprep.subr.bf16.mxu1 %v1215_v57 }
  0xaf   : > { %1218 = vmatpush3.bf16.msra.mxu0 %v1215_v57  ;;  %1266 = vmatpush3.bf16.msra.mxu1 %v1215_v57 }
  0xb2   : > { %1108 = vmatmul.mubr.f32.vlgmr.msra.gmra.mrb[0].mxu0 %v384_v58  ;;  %1120 = vmatmul.mubr.f32.vlgmr.msra.gmra.mrb[0].mxu1 %v392_v59 }
  0xb3   : > { %1110 = vmatprep.mubr.f32.mxu0 %v385_v60  ;;  %1122 = vmatprep.mubr.f32.mxu1 %v393_v61 }
  0xb6   : > { %1111 = vmatmul.mubr.f32.gmra.mrb[2].mxu0 %v386_v62  ;;  %1123 = vmatmul.mubr.f32.gmra.mrb[2].mxu1 %v394_v63 }
  0xb7   : > { %1113 = vmatprep.mubr.f32.mxu0 %v387_v0  ;;  %1125 = vmatprep.mubr.f32.mxu1 %v395_v1 }
  0xba   : > { %1114 = vmatmul.mubr.f32.gmra.mrb[4].mxu0 %v388_v2  ;;  %1126 = vmatmul.mubr.f32.gmra.mrb[4].mxu1 %v396_v3 }
  0xbb   : > { %1116 = vmatprep.mubr.f32.mxu0 %v389_v4  ;;  %1128 = vmatprep.mubr.f32.mxu1 %v397_v5 }
  0xbe   : > { %1117 = vmatmul.mubr.f32.gmra.mrb[6].mxu0 %v390_v6  ;;  %1129 = vmatmul.mubr.f32.gmra.mrb[6].mxu1 %v398_v7 }
 0x185   : > { %v1109_v12 = vpop.f32.mrb[0].mxu0  ;;  %v1121_v13 = vpop.f32.mrb[0].mxu1 }
 0x186   : > { %545 = vst [vmem:[#allocation3 + $0x8] sm:$0xff] %v1109_v12  ;;  %v596_v14 = vadd.f32 %v1109_v12, %v564_v8  ;;  %553 = vst [vmem:[#allocation3 + $0x48] sm:$0xff] %v1121_v13  ;;  %v604_v15 = vadd.f32 %v1121_v13, %v572_v9  ;;  %v465_v16 = vpop.f32.mrb[1].mxu0  ;;  %v505_v17 = vpop.f32.mrb[1].mxu1 }
 0x187   : > { %544 = vst [vmem:[#allocation3] sm:$0xff] %v465_v16  ;;  %v595_v18 = vadd.f32 %v563_v10, %v465_v16  ;;  %552 = vst [vmem:[#allocation3 + $0x40] sm:$0xff] %v505_v17  ;;  %v603_v19 = vadd.f32 %v571_v11, %v505_v17 }
 0x188   : > { %612 = vst [vmem:[#allocation2 + $0x8] sm:$0xff] %v596_v14  ;;  %620 = vst [vmem:[#allocation2 + $0x48] sm:$0xff] %v604_v15 }
 0x189   : > { %611 = vst [vmem:[#allocation2] sm:$0xff] %v595_v18  ;;  %619 = vst [vmem:[#allocation2 + $0x40] sm:$0xff] %v603_v19  ;;  %v1112_v24 = vpop.f32.mrb[2].mxu0  ;;  %v1124_v25 = vpop.f32.mrb[2].mxu1 }
 0x18a   : > { %547 = vst [vmem:[#allocation3 + $0x18] sm:$0xff] %v1112_v24  ;;  %v598_v26 = vadd.f32 %v1112_v24, %v566_v20  ;;  %555 = vst [vmem:[#allocation3 + $0x58] sm:$0xff] %v1124_v25  ;;  %v606_v27 = vadd.f32 %v1124_v25, %v574_v21  ;;  %v475_v28 = vpop.f32.mrb[3].mxu0  ;;  %v515_v29 = vpop.f32.mrb[3].mxu1 }
 0x18b   : > { %546 = vst [vmem:[#allocation3 + $0x10] sm:$0xff] %v475_v28  ;;  %v597_v30 = vadd.f32 %v565_v22, %v475_v28  ;;  %554 = vst [vmem:[#allocation3 + $0x50] sm:$0xff] %v515_v29  ;;  %v605_v31 = vadd.f32 %v573_v23, %v515_v29 }
 0x18c   : > { %614 = vst [vmem:[#allocation2 + $0x18] sm:$0xff] %v598_v26  ;;  %622 = vst [vmem:[#allocation2 + $0x58] sm:$0xff] %v606_v27 }
 0x18d   : > { %613 = vst [vmem:[#allocation2 + $0x10] sm:$0xff] %v597_v30  ;;  %621 = vst [vmem:[#allocation2 + $0x50] sm:$0xff] %v605_v31  ;;  %v1115_v36 = vpop.f32.mrb[4].mxu0  ;;  %v1127_v37 = vpop.f32.mrb[4].mxu1  ;;  %v633_v57 = vld [vmem:[#allocation3 + $0x8] sm:$0xff] (%p627_p10) }
 0x18e   : > { %549 = vst [vmem:[#allocation3 + $0x28] sm:$0xff] %v1115_v36  ;;  %v600_v38 = vadd.f32 %v1115_v36, %v568_v32  ;;  %557 = vst [vmem:[#allocation3 + $0x68] sm:$0xff] %v1127_v37  ;;  %v608_v39 = vadd.f32 %v1127_v37, %v576_v33  ;;  %v485_v40 = vpop.f32.mrb[5].mxu0  ;;  %v525_v41 = vpop.f32.mrb[5].mxu1  ;;  %v632_v56 = vld [vmem:[#allocation3] sm:$0xff] (%p627_p10)  ;;  %v641_v1 = vld [vmem:[#allocation3 + $0x48] sm:$0xff] (%p627_p10) }
 0x18f   : > { %548 = vst [vmem:[#allocation3 + $0x20] sm:$0xff] %v485_v40  ;;  %v599_v42 = vadd.f32 %v567_v34, %v485_v40  ;;  %556 = vst [vmem:[#allocation3 + $0x60] sm:$0xff] %v525_v41  ;;  %v607_v43 = vadd.f32 %v575_v35, %v525_v41  ;;  %631 = sbr.rel (!%p627_p10) target bundleno = 414 (0x19e), region = 64  ;;  %v640_v0 = vld [vmem:[#allocation3 + $0x40] sm:$0xff] (%p627_p10) }
 0x190   : > { %616 = vst [vmem:[#allocation2 + $0x28] sm:$0xff] %v600_v38  ;;  %624 = vst [vmem:[#allocation2 + $0x68] sm:$0xff] %v608_v39 }
 0x191   : > { %615 = vst [vmem:[#allocation2 + $0x20] sm:$0xff] %v599_v42  ;;  %623 = vst [vmem:[#allocation2 + $0x60] sm:$0xff] %v607_v43  ;;  %v1118_v48 = vpop.f32.mrb[6].mxu0  ;;  %v1130_v49 = vpop.f32.mrb[6].mxu1  ;;  %v635_v59 = vld [vmem:[#allocation3 + $0x18] sm:$0xff] (%p627_p10) }
 0x192   : > { %551 = vst [vmem:[#allocation3 + $0x38] sm:$0xff] %v1118_v48  ;;  %v602_v50 = vadd.f32 %v1118_v48, %v570_v44  ;;  %559 = vst [vmem:[#allocation3 + $0x78] sm:$0xff] %v1130_v49  ;;  %v610_v51 = vadd.f32 %v1130_v49, %v578_v45  ;;  %v495_v52 = vpop.f32.mrb[7].mxu0  ;;  %v535_v53 = vpop.f32.mrb[7].mxu1  ;;  %v634_v58 = vld [vmem:[#allocation3 + $0x10] sm:$0xff] (%p627_p10)  ;;  %v643_v3 = vld [vmem:[#allocation3 + $0x58] sm:$0xff] (%p627_p10) }
 0x193   : > { %550 = vst [vmem:[#allocation3 + $0x30] sm:$0xff] %v495_v52  ;;  %v601_v54 = vadd.f32 %v569_v46, %v495_v52  ;;  %558 = vst [vmem:[#allocation3 + $0x70] sm:$0xff] %v535_v53  ;;  %v609_v55 = vadd.f32 %v577_v47, %v535_v53  ;;  %v642_v2 = vld [vmem:[#allocation3 + $0x50] sm:$0xff] (%p627_p10) }
 0x194   : > { %618 = vst [vmem:[#allocation2 + $0x38] sm:$0xff] %v602_v50  ;;  %626 = vst [vmem:[#allocation2 + $0x78] sm:$0xff] %v610_v51 }
 0x195   : > { %617 = vst [vmem:[#allocation2 + $0x30] sm:$0xff] %v601_v54  ;;  %625 = vst [vmem:[#allocation2 + $0x70] sm:$0xff] %v609_v55  ;;  %v637_v61 = vld [vmem:[#allocation3 + $0x28] sm:$0xff] (%p627_p10) }
 0x196   : > { %648 = vst [vmem:[#allocation4] sm:$0xff] %v632_v56  ;;  %649 = vst [vmem:[#allocation4 + $0x8] sm:$0xff] %v633_v57  ;;  %v636_v60 = vld [vmem:[#allocation3 + $0x20] sm:$0xff]  ;;  %v645_v5 = vld [vmem:[#allocation3 + $0x68] sm:$0xff] }
 0x197   : > { %650 = vst [vmem:[#allocation4 + $0x10] sm:$0xff] %v634_v58  ;;  %651 = vst [vmem:[#allocation4 + $0x18] sm:$0xff] %v635_v59  ;;  %v644_v4 = vld [vmem:[#allocation3 + $0x60] sm:$0xff] }
 0x198   : > { %652 = vst [vmem:[#allocation4 + $0x20] sm:$0xff] %v636_v60  ;;  %653 = vst [vmem:[#allocation4 + $0x28] sm:$0xff] %v637_v61 }
 0x199   : > { %v639_v63 = vld [vmem:[#allocation3 + $0x38] sm:$0xff]  ;;  %656 = vst [vmem:[#allocation4 + $0x40] sm:$0xff] %v640_v0  ;;  %657 = vst [vmem:[#allocation4 + $0x48] sm:$0xff] %v641_v1 }
 0x19a   : > { %v638_v62 = vld [vmem:[#allocation3 + $0x30] sm:$0xff]  ;;  %655 = vst [vmem:[#allocation4 + $0x38] sm:$0xff] %v639_v63  ;;  %658 = vst [vmem:[#allocation4 + $0x50] sm:$0xff] %v642_v2  ;;  %v647_v7 = vld [vmem:[#allocation3 + $0x78] sm:$0xff] }
 0x19b   : > { %654 = vst [vmem:[#allocation4 + $0x30] sm:$0xff] %v638_v62  ;;  %659 = vst [vmem:[#allocation4 + $0x58] sm:$0xff] %v643_v3  ;;  %v646_v6 = vld [vmem:[#allocation3 + $0x70] sm:$0xff] }
 0x19c   : > { %660 = vst [vmem:[#allocation4 + $0x60] sm:$0xff] %v644_v4  ;;  %661 = vst [vmem:[#allocation4 + $0x68] sm:$0xff] %v645_v5 }
 0x19d   : > { %662 = vst [vmem:[#allocation4 + $0x70] sm:$0xff] %v646_v6  ;;  %663 = vst [vmem:[#allocation4 + $0x78] sm:$0xff] %v647_v7 }
 0x19e PF: > { %665 = sbr.rel (!%p280_p4) target bundleno = 679 (0x2a7), region = 68  ;;  %v682_v8 = vld [vmem:[%s1818_s27] sm:$0xff] (%p280_p4)  ;;  %v683_v9 = vld [vmem:[%s1818_s27 + $0x8] sm:$0xff] (%p280_p4)  ;;  %v684_v10 = vld [vmem:[%s1818_s27 + $0x10] sm:$0xff] (%p280_p4)  ;;  %v701_v48 = vlaneseq (%p280_p4) }
 0x19f   : > { %v1219_v11 = vpack.c.bf16 (%p280_p4), %v683_v9, %v682_v8  ;;  %v685_v12 = vld [vmem:[%s1818_s27 + $0x18] sm:$0xff] (%p280_p4)  ;;  %v686_v14 = vld [vmem:[%s1818_s27 + $0x20] sm:$0xff] (%p280_p4)  ;;  %v687_v15 = vld [vmem:[%s1818_s27 + $0x28] sm:$0xff] (%p280_p4) }
 0x1a0   : > { %v1223_v13 = vpack.c.bf16 (%p280_p4), %v685_v12, %v684_v10  ;;  %v1227_v16 = vpack.c.bf16 (%p280_p4), %v687_v15, %v686_v14  ;;  %v666_v17 = vld [vmem:[#allocation2] sm:$0xff] (%p280_p4)  ;;  %v688_v19 = vld [vmem:[%s1818_s27 + $0x30] sm:$0xff] (%p280_p4)  ;;  %v689_v20 = vld [vmem:[%s1818_s27 + $0x38] sm:$0xff] (%p280_p4)  ;;  %v702_v49 = vshrl.u32 (%p280_p4), %v701_v48, 7 }
 0x1a1   : > { %1220 = vmatprep.subr.bf16.mxu0 (%p280_p4), %v1219_v11  ;;  %1267 = vmatprep.subr.bf16.mxu1 (%p280_p4), %v1219_v11  ;;  %v674_v18 = vld [vmem:[#allocation2 + $0x40] sm:$0xff] (%p280_p4)  ;;  %v1231_v21 = vpack.c.bf16 (%p280_p4), %v689_v20, %v688_v19  ;;  %v691_v23 = vld [vmem:[%s1818_s27 + $0x48] sm:$0xff] (%p280_p4)  ;;  %v692_v25 = vld [vmem:[%s1818_s27 + $0x50] sm:$0xff] (%p280_p4) }
 0x1a2   : > { %1222 = vmatpush3.bf16.msra.mxu0 (%p280_p4), %v1219_v11  ;;  %1275 = vmatpush3.bf16.msra.mxu1 (%p280_p4), %v1219_v11  ;;  %v690_v22 = vld [vmem:[%s1818_s27 + $0x40] sm:$0xff] (%p280_p4)  ;;  %v693_v26 = vld [vmem:[%s1818_s27 + $0x58] sm:$0xff] (%p280_p4)  ;;  %v695_v29 = vld [vmem:[%s1818_s27 + $0x68] sm:$0xff] (%p280_p4)  ;;  %v703_v52 = vsub.s32 (%p280_p4), 0, %v702_v49 }
 0x1a3   : > { %1224 = vmatprep.subr.bf16.mxu0 (%p280_p4), %v1223_v13  ;;  %1268 = vmatprep.subr.bf16.mxu1 (%p280_p4), %v1223_v13  ;;  %v1235_v24 = vpack.c.bf16 (%p280_p4), %v691_v23, %v690_v22  ;;  %v1239_v27 = vpack.c.bf16 (%p280_p4), %v693_v26, %v692_v25  ;;  %v694_v28 = vld [vmem:[%s1818_s27 + $0x60] sm:$0xff] (%p280_p4)  ;;  %v696_v31 = vld [vmem:[%s1818_s27 + $0x70] sm:$0xff] (%p280_p4)  ;;  %v697_v32 = vld [vmem:[%s1818_s27 + $0x78] sm:$0xff] (%p280_p4) }
 0x1a4   : > { %1163 = vmatprep.mubr.f32.mxu0 (%p280_p4), %v666_v17  ;;  %1175 = vmatprep.mubr.f32.mxu1 (%p280_p4), %v674_v18  ;;  %v1243_v30 = vpack.c.bf16 (%p280_p4), %v695_v29, %v694_v28  ;;  %v1247_v33 = vpack.c.bf16 (%p280_p4), %v697_v32, %v696_v31  ;;  %v667_v34 = vld [vmem:[#allocation2 + $0x8] sm:$0xff] (%p280_p4)  ;;  %v668_v36 = vld [vmem:[#allocation2 + $0x10] sm:$0xff] (%p280_p4)  ;;  %v669_v38 = vld [vmem:[#allocation2 + $0x18] sm:$0xff] (%p280_p4) }
 0x1a5   : > { %v675_v35 = vld [vmem:[#allocation2 + $0x48] sm:$0xff]  ;;  %v676_v37 = vld [vmem:[#allocation2 + $0x50] sm:$0xff]  ;;  %v677_v39 = vld [vmem:[#allocation2 + $0x58] sm:$0xff] }
 0x1a6   : > { %1226 = vmatpush3.bf16.msra.mxu0 %v1223_v13  ;;  %1276 = vmatpush3.bf16.msra.mxu1 %v1223_v13  ;;  %v670_v40 = vld [vmem:[#allocation2 + $0x20] sm:$0xff]  ;;  %v671_v42 = vld [vmem:[#allocation2 + $0x28] sm:$0xff]  ;;  %v672_v44 = vld [vmem:[#allocation2 + $0x30] sm:$0xff] }
 0x1a7   : > { %1228 = vmatprep.subr.bf16.mxu0 %v1227_v16  ;;  %1269 = vmatprep.subr.bf16.mxu1 %v1227_v16  ;;  %v678_v41 = vld [vmem:[#allocation2 + $0x60] sm:$0xff]  ;;  %v679_v43 = vld [vmem:[#allocation2 + $0x68] sm:$0xff]  ;;  %v680_v45 = vld [vmem:[#allocation2 + $0x70] sm:$0xff] }
 0x1a8   : > { %v673_v46 = vld [vmem:[#allocation2 + $0x38] sm:$0xff]  ;;  %v698_v50 = vld [vmem:[%s270_s24] sm:$0x1] }
 0x1a9   : > { %v681_v47 = vld [vmem:[#allocation2 + $0x78] sm:$0xff]  ;;  %v699_v51 = vmul.f32 3.0, %v698_v50 }
 0x1aa   : > { %1230 = vmatpush3.bf16.msra.mxu0 %v1227_v16  ;;  %1277 = vmatpush3.bf16.msra.mxu1 %v1227_v16 }
 0x1ab   : > { %1232 = vmatprep.subr.bf16.mxu0 %v1231_v21  ;;  %1270 = vmatprep.subr.bf16.mxu1 %v1231_v21  ;;  %v704_v53 = vrot.slane %v699_v51, %v703_v52 }
 0x1ae   : > { %1234 = vmatpush3.bf16.msra.mxu0 %v1231_v21  ;;  %1278 = vmatpush3.bf16.msra.mxu1 %v1231_v21 }
 0x1af   : > { %1236 = vmatprep.subr.bf16.mxu0 %v1235_v24  ;;  %1271 = vmatprep.subr.bf16.mxu1 %v1235_v24 }
 0x1b2   : > { %1238 = vmatpush3.bf16.msra.mxu0 %v1235_v24  ;;  %1279 = vmatpush3.bf16.msra.mxu1 %v1235_v24 }
 0x1b3   : > { %1240 = vmatprep.subr.bf16.mxu0 %v1239_v27  ;;  %1272 = vmatprep.subr.bf16.mxu1 %v1239_v27 }
 0x1b6   : > { %1242 = vmatpush3.bf16.msra.mxu0 %v1239_v27  ;;  %1280 = vmatpush3.bf16.msra.mxu1 %v1239_v27 }
 0x1b7   : > { %1244 = vmatprep.subr.bf16.mxu0 %v1243_v30  ;;  %1273 = vmatprep.subr.bf16.mxu1 %v1243_v30 }
 0x1ba   : > { %1246 = vmatpush3.bf16.msra.mxu0 %v1243_v30  ;;  %1281 = vmatpush3.bf16.msra.mxu1 %v1243_v30 }
 0x1bb   : > { %1248 = vmatprep.subr.bf16.mxu0 %v1247_v33  ;;  %1274 = vmatprep.subr.bf16.mxu1 %v1247_v33 }
 0x1be   : > { %1250 = vmatpush3.bf16.msra.mxu0 %v1247_v33  ;;  %1282 = vmatpush3.bf16.msra.mxu1 %v1247_v33 }
 0x1c1   : > { %1164 = vmatmul.mubr.f32.vlgmr.msra.gmra.mrb[0].mxu0 %v667_v34  ;;  %1176 = vmatmul.mubr.f32.vlgmr.msra.gmra.mrb[0].mxu1 %v675_v35 }
 0x1c2   : > { %1166 = vmatprep.mubr.f32.mxu0 %v668_v36  ;;  %1178 = vmatprep.mubr.f32.mxu1 %v676_v37 }
 0x1c5   : > { %1167 = vmatmul.mubr.f32.gmra.mrb[2].mxu0 %v669_v38  ;;  %1179 = vmatmul.mubr.f32.gmra.mrb[2].mxu1 %v677_v39 }
 0x1c6   : > { %1169 = vmatprep.mubr.f32.mxu0 %v670_v40  ;;  %1181 = vmatprep.mubr.f32.mxu1 %v678_v41 }
 0x1c9   : > { %1170 = vmatmul.mubr.f32.gmra.mrb[4].mxu0 %v671_v42  ;;  %1182 = vmatmul.mubr.f32.gmra.mrb[4].mxu1 %v679_v43 }
 0x1ca   : > { %1172 = vmatprep.mubr.f32.mxu0 %v672_v44  ;;  %1184 = vmatprep.mubr.f32.mxu1 %v680_v45 }
 0x1cd   : > { %1173 = vmatmul.mubr.f32.gmra.mrb[6].mxu0 %v673_v46  ;;  %1185 = vmatmul.mubr.f32.gmra.mrb[6].mxu1 %v681_v47 }
 0x294   : > { %v1165_v54 = vpop.f32.mrb[0].mxu0  ;;  %v1177_v55 = vpop.f32.mrb[0].mxu1 }
 0x295   : > { %v778_v56 = vadd.f32 %v1165_v54, %v704_v53  ;;  %v818_v57 = vadd.f32 %v1177_v55, %v704_v53  ;;  %v772_v58 = vpop.f32.mrb[1].mxu0  ;;  %v812_v59 = vpop.f32.mrb[1].mxu1 }
 0x296   : > { %v773_v60 = vadd.f32 %v772_v58, %v704_v53  ;;  %v813_v61 = vadd.f32 %v812_v59, %v704_v53 }
 0x297   : > { %v852_v62 = vmax.f32 %v778_v56, 0.0  ;;  %v860_v63 = vmax.f32 %v818_v57, 0.0 }
 0x298   : > { %v851_v0 = vmax.f32 %v773_v60, 0.0  ;;  %v859_v1 = vmax.f32 %v813_v61, 0.0  ;;  %v1168_v2 = vpop.f32.mrb[2].mxu0  ;;  %v1180_v3 = vpop.f32.mrb[2].mxu1 }
 0x299   : > { %868 = vst [vmem:[#allocation11 + $0x8] sm:$0xff] %v852_v62  ;;  %876 = vst [vmem:[#allocation11 + $0x48] sm:$0xff] %v860_v63  ;;  %v788_v4 = vadd.f32 %v1168_v2, %v704_v53  ;;  %v828_v5 = vadd.f32 %v1180_v3, %v704_v53  ;;  %v782_v6 = vpop.f32.mrb[3].mxu0  ;;  %v822_v7 = vpop.f32.mrb[3].mxu1 }
 0x29a   : > { %867 = vst [vmem:[#allocation11] sm:$0xff] %v851_v0  ;;  %875 = vst [vmem:[#allocation11 + $0x40] sm:$0xff] %v859_v1  ;;  %v783_v8 = vadd.f32 %v782_v6, %v704_v53  ;;  %v823_v9 = vadd.f32 %v822_v7, %v704_v53 }
 0x29b   : > { %v854_v10 = vmax.f32 %v788_v4, 0.0  ;;  %v862_v11 = vmax.f32 %v828_v5, 0.0 }
 0x29c   : > { %v853_v12 = vmax.f32 %v783_v8, 0.0  ;;  %v861_v13 = vmax.f32 %v823_v9, 0.0  ;;  %v1171_v14 = vpop.f32.mrb[4].mxu0  ;;  %v1183_v15 = vpop.f32.mrb[4].mxu1 }
 0x29d   : > { %870 = vst [vmem:[#allocation11 + $0x18] sm:$0xff] %v854_v10  ;;  %878 = vst [vmem:[#allocation11 + $0x58] sm:$0xff] %v862_v11  ;;  %v798_v16 = vadd.f32 %v1171_v14, %v704_v53  ;;  %v838_v17 = vadd.f32 %v1183_v15, %v704_v53  ;;  %v792_v18 = vpop.f32.mrb[5].mxu0  ;;  %v832_v19 = vpop.f32.mrb[5].mxu1 }
 0x29e   : > { %869 = vst [vmem:[#allocation11 + $0x10] sm:$0xff] %v853_v12  ;;  %877 = vst [vmem:[#allocation11 + $0x50] sm:$0xff] %v861_v13  ;;  %v793_v20 = vadd.f32 %v792_v18, %v704_v53  ;;  %v833_v21 = vadd.f32 %v832_v19, %v704_v53 }
 0x29f   : > { %v856_v22 = vmax.f32 %v798_v16, 0.0  ;;  %v864_v23 = vmax.f32 %v838_v17, 0.0 }
 0x2a0   : > { %v855_v24 = vmax.f32 %v793_v20, 0.0  ;;  %v863_v25 = vmax.f32 %v833_v21, 0.0  ;;  %v1174_v26 = vpop.f32.mrb[6].mxu0  ;;  %v1186_v27 = vpop.f32.mrb[6].mxu1 }
 0x2a1   : > { %872 = vst [vmem:[#allocation11 + $0x28] sm:$0xff] %v856_v22  ;;  %880 = vst [vmem:[#allocation11 + $0x68] sm:$0xff] %v864_v23  ;;  %v808_v28 = vadd.f32 %v1174_v26, %v704_v53  ;;  %v848_v29 = vadd.f32 %v1186_v27, %v704_v53  ;;  %v802_v30 = vpop.f32.mrb[7].mxu0  ;;  %v842_v31 = vpop.f32.mrb[7].mxu1 }
 0x2a2   : > { %871 = vst [vmem:[#allocation11 + $0x20] sm:$0xff] %v855_v24  ;;  %879 = vst [vmem:[#allocation11 + $0x60] sm:$0xff] %v863_v25  ;;  %v803_v32 = vadd.f32 %v802_v30, %v704_v53  ;;  %v843_v33 = vadd.f32 %v842_v31, %v704_v53 }
 0x2a3   : > { %v858_v34 = vmax.f32 %v808_v28, 0.0  ;;  %v866_v35 = vmax.f32 %v848_v29, 0.0 }
 0x2a4   : > { %v857_v36 = vmax.f32 %v803_v32, 0.0  ;;  %v865_v37 = vmax.f32 %v843_v33, 0.0 }
 0x2a5   : > { %874 = vst [vmem:[#allocation11 + $0x38] sm:$0xff] %v858_v34  ;;  %882 = vst [vmem:[#allocation11 + $0x78] sm:$0xff] %v866_v35 }
 0x2a6   : > { %873 = vst [vmem:[#allocation11 + $0x30] sm:$0xff] %v857_v36  ;;  %881 = vst [vmem:[#allocation11 + $0x70] sm:$0xff] %v865_v37 }
 0x2a7 PF: > { %p1313_p13 = scmp.eq.s32.totalorder %s1650_s23, 3  ;;  %s1583_s19 = smov [#allocation11]  }
 0x2a8   : > { %s889_s28 = sshll.u32 %s1583_s19, 4  ;;  %s890_s28 = int_to_ptr.vmem [resolvable:$true] %s889_s28 }
 0x2a9   : > { %s1472_s26 = scalar_lea.vmem %s890_s28, 2048  ;;  %p1479_p9 = scmp.lt.s32.totalorder %s890_s28, %s890_s28 }
 0x2aa   : > { %p1473_p1 = scmp.ne.s32.totalorder %s890_s28, %s1472_s26  ;;  %p1480_p3 = scmp.lt.s32.totalorder %s1472_s26, %s1472_s26 }
 0x2ac   : > { %p1474_p8 = pnand %p1473_p1, %p1313_p13  ;;  %p1481_p6 = por %p1480_p3, %p1479_p9 }
 0x2ae   : > { %p1475_p5 = pneg %p1474_p8 }
 0x2b0   : > { %p1482_p12 = pnand %p1481_p6, %p1475_p5 }
 0x2b2   : > { %1485 = shalt.err (!%p1482_p12)
}
 0x2b3   : > { %s1486_s13 = scalar_lea.hbm %s1916_s4, 2048 }
 0x2b4   : > { %p1487_p11 = scmp.ne.s32.totalorder %s1916_s4, %s1486_s13  ;;  %p1492_p4 = scmp.lt.u32.totalorder %s1486_s13, %s1916_s4 }
 0x2b6   : > { %p1488_p0 = pnand %p1487_p11, %p1313_p13 }
 0x2b8   : > { %p1489_p2 = pneg %p1488_p0 }
 0x2ba   : > { %p1494_p7 = pnand %p1492_p4, %p1489_p2 }
 0x2bc   : > { %1497 = shalt.err (!%p1494_p7)
}
 0x2bd   : > { %s1584_s25 = smov 128   ;;  %s1585_s27 = smov 8  }
 0x2be   : > { %1294 = dma.vmem_to_hbm [thread:$0]  (%p1313_p13), %s890_s28, 2048, %s1916_s4, [#allocation7], %s1584_s25, %s1584_s25, %s1585_s27  }
 0x2bf   : > { %1543 = dma.done.wait (%p1313_p13), [#allocation7], 2048  }
 0x2c0   : > { %1545 = vsyncadd (%p1313_p13), [#allocation7], 4294965248 }
 0x2c1 PF: > { %s17_s22 = sadd.s32 1, %s1576_s22   ;;  %s1934_s15 = smov %s1552_s16 }
 0x2c2   : > { %p14_p10 = scmp.ge.s32.totalorder %s17_s22, 6   ;;  %s1935_s16 = smov %s1556_s17 }
 0x2c3   : > { %s1936_s17 = smov %s1804_s5  ;;  %s1937_s18 = smov %s1568_s20 }
 0x2c4   : > { %s1938_s19 = smov %s1572_s21  ;;  %s1939_s20 = smov %s1942_s30 }
 0x2c5   : > { %s1940_s21 = smov %s1946_s6  ;;  %16 = sbr.rel (!%p14_p10) target bundleno = 6 (0x6), region = 104 }
 0x2cc   :  { %905 = vsyncpa [#allocation6], 1 }
 0x2cd   :  { %907 = vsyncpa [#allocation6 + $0x1], 1 }
 0x2ce   :  { %908 = vsyncpa [#allocation9], 1 }
 0x2cf   :  { %909 = vsyncpa [#allocation7], 1 }
 0x2d0   :  { %911 = vsyncpa [#allocation7 + $0x1], 1 }

</bundles_post_ra>
